<compile_context>
chip_gen: v7x
topology: tpu7x:2x2x1
jax: 0.10.0
libtpu: 0.0.40
codegen_flags: <defaults>
</compile_context>

<pallas_src>
import jax
import jax.numpy as jnp
from jax.experimental import pallas as pl
from jax.experimental.pallas import tpu as pltpu

IN_DIM = 28 * 28
HID = 64
OUT = 10
OUT_PAD = 128  # lane-dense output width


def mlp_kernel(x_ref,
               w1_ref, b1_ref,
               w2_ref, b2_ref,
               w3_ref, b3_ref,
               w4_ref, b4_ref,
               out_ref):
    # Cast x to bf16 in-kernel (MXU native); accumulate in f32.
    x = x_ref[...].astype(jnp.bfloat16)
    # Layer 1: 784 -> 64, ReLU
    h = jnp.dot(x, w1_ref[...], preferred_element_type=jnp.float32)
    h = jnp.maximum(h + b1_ref[...], 0.0)
    # Layer 2: 64 -> 64, ReLU
    h = jnp.dot(h.astype(jnp.bfloat16), w2_ref[...],
                preferred_element_type=jnp.float32)
    h = jnp.maximum(h + b2_ref[...], 0.0)
    # Layer 3: 64 -> 64, ReLU
    h = jnp.dot(h.astype(jnp.bfloat16), w3_ref[...],
                preferred_element_type=jnp.float32)
    h = jnp.maximum(h + b3_ref[...], 0.0)
    # Layer 4: 64 -> 128 (lanes 10..127 are padding: zero weights, -1e30 bias)
    logits = jnp.dot(h.astype(jnp.bfloat16), w4_ref[...],
                     preferred_element_type=jnp.float32)
    logits = logits + b4_ref[...]
    # log_softmax along features (f32); pad lanes contribute exp(-huge) = 0.
    m = jnp.max(logits, axis=-1, keepdims=True)
    shifted = logits - m
    lse = jnp.log(jnp.sum(jnp.exp(shifted), axis=-1, keepdims=True))
    out_ref[...] = (shifted - lse).astype(out_ref.dtype)


def prepare_params(params):
    """One-time weight prep: bf16 weights, f32 biases, layer-4 padded to 128 lanes."""
    return {
        "w1": params["w1"].astype(jnp.bfloat16),
        "w2": params["w2"].astype(jnp.bfloat16),
        "w3": params["w3"].astype(jnp.bfloat16),
        "w4": jnp.pad(params["w4"],
                      ((0, 0), (0, OUT_PAD - OUT))).astype(jnp.bfloat16),
        "b1": params["b1"].astype(jnp.float32),
        "b2": params["b2"].astype(jnp.float32),
        "b3": params["b3"].astype(jnp.float32),
        "b4": jnp.pad(params["b4"].astype(jnp.float32),
                      ((0, 0), (0, OUT_PAD - OUT)), constant_values=-1e30),
    }


def _round_up(v, m):
    return ((v + m - 1) // m) * m


def _pick_tb(batch, max_tb=1024):
    """Adaptive batch tile.

    Small batches get a single small tile (no wasteful 256/1024-row padding).
    Larger batches are split into >=2 tiles (feeds both v7x TensorCores via the
    "parallel" grid axis), capped at 1024 rows: big enough to amortize the
    ~0.35 us/step grid overhead on this HBM-bound kernel, small enough to fit
    comfortably in VMEM on every generation (v5e/v6e 128 MiB, v7x 64 MiB).
    """
    if batch <= 16:
        return _round_up(max(batch, 1), 16)
    return min(max_tb, _round_up((batch + 1) // 2, 16))


def net_forward(x, prepped, *, tb=None, out_dtype=jnp.bfloat16):
    """x: [B, 784] float32; prepped: output of prepare_params()."""
    B = x.shape[0]
    if tb is None:
        tb = _pick_tb(B)
    n_tiles = pl.cdiv(B, tb)
    b_pad = n_tiles * tb

    # Only materialize a padded copy when B isn't already a tile multiple.
    xp = x if b_pad == B else jnp.pad(x, ((0, b_pad - B), (0, 0)))

    const2 = lambda i: (0, 0)  # weights/biases stay VMEM-resident across steps

    out = pl.pallas_call(
        mlp_kernel,
        out_shape=jax.ShapeDtypeStruct((b_pad, OUT_PAD), out_dtype),
        grid=(n_tiles,),
        in_specs=[
            pl.BlockSpec((tb, IN_DIM), lambda i: (i, 0)),
            pl.BlockSpec(prepped["w1"].shape, const2),
            pl.BlockSpec(prepped["b1"].shape, const2),
            pl.BlockSpec(prepped["w2"].shape, const2),
            pl.BlockSpec(prepped["b2"].shape, const2),
            pl.BlockSpec(prepped["w3"].shape, const2),
            pl.BlockSpec(prepped["b3"].shape, const2),
            pl.BlockSpec(prepped["w4"].shape, const2),
            pl.BlockSpec(prepped["b4"].shape, const2),
        ],
        out_specs=pl.BlockSpec((tb, OUT_PAD), lambda i: (i, 0)),
        compiler_params=pltpu.CompilerParams(
            dimension_semantics=("parallel",),
            vmem_limit_bytes=32 << 20,
        ),
    )(xp,
      prepped["w1"], prepped["b1"],
      prepped["w2"], prepped["b2"],
      prepped["w3"], prepped["b3"],
      prepped["w4"], prepped["b4"])

    return out[:B, :OUT]


def net_reference(x, params):
    """Pure-JAX f32 reference for sanity checking."""
    h = jnp.maximum(x @ params["w1"] + params["b1"], 0.0)
    h = jnp.maximum(h @ params["w2"] + params["b2"], 0.0)
    h = jnp.maximum(h @ params["w3"] + params["b3"], 0.0)
    logits = h @ params["w4"] + params["b4"]
    return jax.nn.log_softmax(logits, axis=-1)


def init_params(key):
    """Deterministic synthetic init matching nn.Linear shapes (uniform, kaiming-like)."""
    sizes = [(IN_DIM, HID), (HID, HID), (HID, HID), (HID, OUT)]
    params = {}
    for i, (fan_in, fan_out) in enumerate(sizes, start=1):
        key, kw, kb = jax.random.split(key, 3)
        bound = 1.0 / (fan_in ** 0.5)
        params[f"w{i}"] = jax.random.uniform(
            kw, (fan_in, fan_out), jnp.float32, minval=-bound, maxval=bound)
        params[f"b{i}"] = jax.random.uniform(
            kb, (1, fan_out), jnp.float32, minval=-bound, maxval=bound)
    return params


if __name__ == "__main__":
    key = jax.random.PRNGKey(0)
    key, kx = jax.random.split(key)
    B = 8
    x = jax.random.normal(kx, (B, IN_DIM), jnp.float32)
    params = init_params(key)

    # Weight prep hoisted out of the hot path (done once).
    prepped = jax.tree_util.tree_map(jax.block_until_ready, prepare_params(params))

    fwd = jax.jit(net_forward)
    out = jax.block_until_ready(fwd(x, prepped))

    assert out.shape == (B, OUT)
    out_f32 = out.astype(jnp.float32)
    # log_softmax rows must sum (in prob space) to ~1 (bf16-stored log-probs).
    row_sums = jnp.sum(jnp.exp(out_f32), axis=1)
    assert bool(jnp.all(jnp.abs(row_sums - 1.0) < 2e-2)), row_sums
    # loose comparison against f32 reference (MXU in bf16, bf16 output store)
    ref = net_reference(x, params)
    assert bool(jnp.all(jnp.abs(out_f32 - ref) < 0.1)), jnp.max(jnp.abs(out_f32 - ref))

    print("KERNEL_OK")
</pallas_src>

<mosaic_0001>
module attributes {stable_mosaic.version = 11 : i64} {
  func.func @mlp_kernel(%arg0: i32, %arg1: memref<16x784xf32, #tpu.memory_space<vmem>>, %arg2: memref<784x64xbf16, #tpu.memory_space<vmem>>, %arg3: memref<1x64xf32, #tpu.memory_space<vmem>>, %arg4: memref<64x64xbf16, #tpu.memory_space<vmem>>, %arg5: memref<1x64xf32, #tpu.memory_space<vmem>>, %arg6: memref<64x64xbf16, #tpu.memory_space<vmem>>, %arg7: memref<1x64xf32, #tpu.memory_space<vmem>>, %arg8: memref<64x128xbf16, #tpu.memory_space<vmem>>, %arg9: memref<1x128xf32, #tpu.memory_space<vmem>>, %arg10: memref<16x128xbf16, #tpu.memory_space<vmem>>) attributes {dimension_semantics = [#tpu.dimension_semantics<parallel>], iteration_bounds = array<i64: 1>, scalar_prefetch = 0 : i64, scratch_operands = 0 : i64, tpu.core_type = #tpu.core_type<tc>, window_params = [{transform_indices = @transform_0, window_bounds = array<i64: 16, 784>}, {pipeline_mode = #tpu.pipeline_mode<synchronous>, transform_indices = @transform_1, window_bounds = array<i64: 784, 64>}, {pipeline_mode = #tpu.pipeline_mode<synchronous>, transform_indices = @transform_2, window_bounds = array<i64: 1, 64>}, {pipeline_mode = #tpu.pipeline_mode<synchronous>, transform_indices = @transform_3, window_bounds = array<i64: 64, 64>}, {pipeline_mode = #tpu.pipeline_mode<synchronous>, transform_indices = @transform_4, window_bounds = array<i64: 1, 64>}, {pipeline_mode = #tpu.pipeline_mode<synchronous>, transform_indices = @transform_5, window_bounds = array<i64: 64, 64>}, {pipeline_mode = #tpu.pipeline_mode<synchronous>, transform_indices = @transform_6, window_bounds = array<i64: 1, 64>}, {pipeline_mode = #tpu.pipeline_mode<synchronous>, transform_indices = @transform_7, window_bounds = array<i64: 64, 128>}, {pipeline_mode = #tpu.pipeline_mode<synchronous>, transform_indices = @transform_8, window_bounds = array<i64: 1, 128>}, {transform_indices = @transform_9, window_bounds = array<i64: 16, 128>}]} {
    %c0 = arith.constant 0 : index
    %c0_0 = arith.constant 0 : index
    %0 = vector.load %arg1[%c0, %c0_0] : memref<16x784xf32, #tpu.memory_space<vmem>>, vector<16x784xf32>
    %1 = arith.truncf %0 : vector<16x784xf32> to vector<16x784xbf16>
    %c0_1 = arith.constant 0 : index
    %c0_2 = arith.constant 0 : index
    %2 = vector.load %arg2[%c0_1, %c0_2] : memref<784x64xbf16, #tpu.memory_space<vmem>>, vector<784x64xbf16>
    %cst = arith.constant dense<0.000000e+00> : vector<16x64xf32>
    %3 = tpu.matmul %1, %2, %cst {dimension_numbers = #tpu.dot_dimension_numbers<[1], [0], [0], [1], [0, 0, 1, 1], [], []>} : vector<16x784xbf16>, vector<784x64xbf16>, vector<16x64xf32> -> vector<16x64xf32>
    %c0_3 = arith.constant 0 : index
    %c0_4 = arith.constant 0 : index
    %4 = vector.load %arg3[%c0_3, %c0_4] : memref<1x64xf32, #tpu.memory_space<vmem>>, vector<1x64xf32>
    %5 = vector.broadcast %4 : vector<1x64xf32> to vector<16x64xf32>
    %6 = arith.addf %3, %5 : vector<16x64xf32>
    %cst_5 = arith.constant 0.000000e+00 : f32
    %7 = vector.broadcast %cst_5 : f32 to vector<16x64xf32>
    %8 = arith.maximumf %6, %7 : vector<16x64xf32>
    %9 = arith.truncf %8 : vector<16x64xf32> to vector<16x64xbf16>
    %c0_6 = arith.constant 0 : index
    %c0_7 = arith.constant 0 : index
    %10 = vector.load %arg4[%c0_6, %c0_7] : memref<64x64xbf16, #tpu.memory_space<vmem>>, vector<64x64xbf16>
    %cst_8 = arith.constant dense<0.000000e+00> : vector<16x64xf32>
    %11 = tpu.matmul %9, %10, %cst_8 {dimension_numbers = #tpu.dot_dimension_numbers<[1], [0], [0], [1], [0, 0, 1, 1], [], []>} : vector<16x64xbf16>, vector<64x64xbf16>, vector<16x64xf32> -> vector<16x64xf32>
    %c0_9 = arith.constant 0 : index
    %c0_10 = arith.constant 0 : index
    %12 = vector.load %arg5[%c0_9, %c0_10] : memref<1x64xf32, #tpu.memory_space<vmem>>, vector<1x64xf32>
    %13 = vector.broadcast %12 : vector<1x64xf32> to vector<16x64xf32>
    %14 = arith.addf %11, %13 : vector<16x64xf32>
    %cst_11 = arith.constant 0.000000e+00 : f32
    %15 = vector.broadcast %cst_11 : f32 to vector<16x64xf32>
    %16 = arith.maximumf %14, %15 : vector<16x64xf32>
    %17 = arith.truncf %16 : vector<16x64xf32> to vector<16x64xbf16>
    %c0_12 = arith.constant 0 : index
    %c0_13 = arith.constant 0 : index
    %18 = vector.load %arg6[%c0_12, %c0_13] : memref<64x64xbf16, #tpu.memory_space<vmem>>, vector<64x64xbf16>
    %cst_14 = arith.constant dense<0.000000e+00> : vector<16x64xf32>
    %19 = tpu.matmul %17, %18, %cst_14 {dimension_numbers = #tpu.dot_dimension_numbers<[1], [0], [0], [1], [0, 0, 1, 1], [], []>} : vector<16x64xbf16>, vector<64x64xbf16>, vector<16x64xf32> -> vector<16x64xf32>
    %c0_15 = arith.constant 0 : index
    %c0_16 = arith.constant 0 : index
    %20 = vector.load %arg7[%c0_15, %c0_16] : memref<1x64xf32, #tpu.memory_space<vmem>>, vector<1x64xf32>
    %21 = vector.broadcast %20 : vector<1x64xf32> to vector<16x64xf32>
    %22 = arith.addf %19, %21 : vector<16x64xf32>
    %cst_17 = arith.constant 0.000000e+00 : f32
    %23 = vector.broadcast %cst_17 : f32 to vector<16x64xf32>
    %24 = arith.maximumf %22, %23 : vector<16x64xf32>
    %25 = arith.truncf %24 : vector<16x64xf32> to vector<16x64xbf16>
    %c0_18 = arith.constant 0 : index
    %c0_19 = arith.constant 0 : index
    %26 = vector.load %arg8[%c0_18, %c0_19] : memref<64x128xbf16, #tpu.memory_space<vmem>>, vector<64x128xbf16>
    %cst_20 = arith.constant dense<0.000000e+00> : vector<16x128xf32>
    %27 = tpu.matmul %25, %26, %cst_20 {dimension_numbers = #tpu.dot_dimension_numbers<[1], [0], [0], [1], [0, 0, 1, 1], [], []>} : vector<16x64xbf16>, vector<64x128xbf16>, vector<16x128xf32> -> vector<16x128xf32>
    %c0_21 = arith.constant 0 : index
    %c0_22 = arith.constant 0 : index
    %28 = vector.load %arg9[%c0_21, %c0_22] : memref<1x128xf32, #tpu.memory_space<vmem>>, vector<1x128xf32>
    %29 = vector.broadcast %28 : vector<1x128xf32> to vector<16x128xf32>
    %30 = arith.addf %27, %29 : vector<16x128xf32>
    %cst_23 = arith.constant dense<0xFF800000> : vector<16xf32>
    %31 = vector.multi_reduction <maximumf>, %30, %cst_23 [1] : vector<16x128xf32> to vector<16xf32>
    %32 = vector.shape_cast %31 : vector<16xf32> to vector<16x1xf32>
    %33 = vector.broadcast %32 : vector<16x1xf32> to vector<16x128xf32>
    %34 = arith.subf %30, %33 : vector<16x128xf32>
    %35 = math.exp %34 : vector<16x128xf32>
    %cst_24 = arith.constant dense<0.000000e+00> : vector<16xf32>
    %36 = vector.multi_reduction <add>, %35, %cst_24 [1] : vector<16x128xf32> to vector<16xf32>
    %37 = vector.shape_cast %36 : vector<16xf32> to vector<16x1xf32>
    %38 = math.log %37 : vector<16x1xf32>
    %39 = vector.broadcast %38 : vector<16x1xf32> to vector<16x128xf32>
    %40 = arith.subf %34, %39 : vector<16x128xf32>
    %41 = arith.truncf %40 : vector<16x128xf32> to vector<16x128xbf16>
    %c0_25 = arith.constant 0 : index
    %c0_26 = arith.constant 0 : index
    %42 = vector.load %arg10[%c0_25, %c0_26] : memref<16x128xbf16, #tpu.memory_space<vmem>>, vector<16x128xbf16>
    tpu.vector_store %arg10[%c0_25, %c0_26], %41 {strides = array<i32>} : memref<16x128xbf16, #tpu.memory_space<vmem>>, vector<16x128xbf16>,
    return
  }
  func.func @transform_0(%arg0: i32) -> (i32, i32) {
    %c0_i32 = arith.constant 0 : i32
    %c0_i32_0 = arith.constant 0 : i32
    return %arg0, %c0_i32 : i32, i32
  }
  func.func @transform_1(%arg0: i32) -> (i32, i32) {
    %c0_i32 = arith.constant 0 : i32
    %c0_i32_0 = arith.constant 0 : i32
    %c0_i32_1 = arith.constant 0 : i32
    return %c0_i32, %c0_i32_0 : i32, i32
  }
  func.func @transform_2(%arg0: i32) -> (i32, i32) {
    %c0_i32 = arith.constant 0 : i32
    %c0_i32_0 = arith.constant 0 : i32
    %c0_i32_1 = arith.constant 0 : i32
    return %c0_i32, %c0_i32_0 : i32, i32
  }
  func.func @transform_3(%arg0: i32) -> (i32, i32) {
    %c0_i32 = arith.constant 0 : i32
    %c0_i32_0 = arith.constant 0 : i32
    %c0_i32_1 = arith.constant 0 : i32
    return %c0_i32, %c0_i32_0 : i32, i32
  }
  func.func @transform_4(%arg0: i32) -> (i32, i32) {
    %c0_i32 = arith.constant 0 : i32
    %c0_i32_0 = arith.constant 0 : i32
    %c0_i32_1 = arith.constant 0 : i32
    return %c0_i32, %c0_i32_0 : i32, i32
  }
  func.func @transform_5(%arg0: i32) -> (i32, i32) {
    %c0_i32 = arith.constant 0 : i32
    %c0_i32_0 = arith.constant 0 : i32
    %c0_i32_1 = arith.constant 0 : i32
    return %c0_i32, %c0_i32_0 : i32, i32
  }
  func.func @transform_6(%arg0: i32) -> (i32, i32) {
    %c0_i32 = arith.constant 0 : i32
    %c0_i32_0 = arith.constant 0 : i32
    %c0_i32_1 = arith.constant 0 : i32
    return %c0_i32, %c0_i32_0 : i32, i32
  }
  func.func @transform_7(%arg0: i32) -> (i32, i32) {
    %c0_i32 = arith.constant 0 : i32
    %c0_i32_0 = arith.constant 0 : i32
    %c0_i32_1 = arith.constant 0 : i32
    return %c0_i32, %c0_i32_0 : i32, i32
  }
  func.func @transform_8(%arg0: i32) -> (i32, i32) {
    %c0_i32 = arith.constant 0 : i32
    %c0_i32_0 = arith.constant 0 : i32
    %c0_i32_1 = arith.constant 0 : i32
    return %c0_i32, %c0_i32_0 : i32, i32
  }
  func.func @transform_9(%arg0: i32) -> (i32, i32) {
    %c0_i32 = arith.constant 0 : i32
    %c0_i32_0 = arith.constant 0 : i32
    return %arg0, %c0_i32 : i32, i32
  }
}

</mosaic_0001>

<bundles_post_ra>
// kernel: net_forward.1
= control target key start
LH: loop header
LB: loop body
LE: loop exit
PB: predicated region body
PF: predicated region fallthrough
CT: control target
= control target key end

     0   :  { %v1188_v43 = vmov 0.0   ;;  %vm1189_vm0 = vmmov 0   ;;  %vm453_vm1 = vcmask 130048   ;;  %vm663_vm2 = vcmask 523264   ;;  %s1504_s1 = inlined_call_operand.vmem [shape: bf16[784,64], index: 1, kind: input, shape index: {}]   ;;  %s1505_s0 = inlined_call_operand.vmem [shape: f32[16,784], index: 0, kind: input, shape index: {}]   ;;  %s1506_s3 = inlined_call_operand.vmem [shape: bf16[64,64], index: 3, kind: input, shape index: {}]   ;;  %s1507_s5 = inlined_call_operand.vmem [shape: bf16[64,64], index: 5, kind: input, shape index: {}]   ;;  %s1508_s2 = inlined_call_operand.vmem [shape: f32[1,64], index: 2, kind: input, shape index: {}]   ;;  %s1509_s7 = inlined_call_operand.vmem [shape: bf16[64,128], index: 7, kind: input, shape index: {}]   ;;  %s1510_s4 = inlined_call_operand.vmem [shape: f32[1,64], index: 4, kind: input, shape index: {}]   ;;  %s1511_s6 = inlined_call_operand.vmem [shape: f32[1,64], index: 6, kind: input, shape index: {}]   ;;  %s1512_s8 = inlined_call_operand.vmem [shape: f32[1,128], index: 8, kind: input, shape index: {}]   ;;  %s1513_s9 = inlined_call_operand.vmem [shape: bf16[16,128], index: 9, kind: output, shape index: {}]  }
   0x1   :  { %v1119_v0 = vld [vmem:[%s1504_s1 + $0x40] sm:$0xff]   ;;  %v1123_v4 = vld [vmem:[%s1504_s1 + $0x48] sm:$0xff]   ;;  %v1127_v8 = vld [vmem:[%s1504_s1 + $0x50] sm:$0xff]  }
   0x2   :  { %v1120_v1 = vld [vmem:[%s1504_s1] sm:$0xff]   ;;  %992 = vmatprep.subr.bf16.mxu0 %v1119_v0  ;;  %v1124_v5 = vld [vmem:[%s1504_s1 + $0x8] sm:$0xff]   ;;  %v1128_v9 = vld [vmem:[%s1504_s1 + $0x10] sm:$0xff]  }
   0x3   :  { %v1121_v2 = vld [vmem:[%s1504_s1 + $0xc0] sm:$0xff]   ;;  %993 = vmatpush3.bf16.msra.mxu0 %v1120_v1  ;;  %v1125_v6 = vld [vmem:[%s1504_s1 + $0xc8] sm:$0xff]   ;;  %v1129_v10 = vld [vmem:[%s1504_s1 + $0xd0] sm:$0xff]  }
   0x4   :  { %v1122_v3 = vld [vmem:[%s1504_s1 + $0x80] sm:$0xff]   ;;  %1014 = vmatprep.subr.bf16.mxu1 %v1121_v2  ;;  %994 = vmatprep.subr.bf16.mxu0 %v1123_v4  ;;  %v1126_v7 = vld [vmem:[%s1504_s1 + $0x88] sm:$0xff]   ;;  %v1130_v11 = vld [vmem:[%s1504_s1 + $0x90] sm:$0xff]  }
   0x5   :  { %1015 = vmatpush3.bf16.msra.mxu1 %v1122_v3  ;;  %v1131_v12 = vld [vmem:[%s1504_s1 + $0x58] sm:$0xff]   ;;  %v1135_v16 = vld [vmem:[%s1504_s1 + $0x60] sm:$0xff]   ;;  %v1139_v20 = vld [vmem:[%s1504_s1 + $0x68] sm:$0xff]  }
   0x6   :  { %1016 = vmatprep.subr.bf16.mxu1 %v1125_v6  ;;  %v1132_v13 = vld [vmem:[%s1504_s1 + $0x18] sm:$0xff]   ;;  %v1136_v17 = vld [vmem:[%s1504_s1 + $0x20] sm:$0xff]   ;;  %v1140_v21 = vld [vmem:[%s1504_s1 + $0x28] sm:$0xff]  }
   0x7   :  { %995 = vmatpush3.bf16.msra.mxu0 %v1124_v5  ;;  %v1133_v14 = vld [vmem:[%s1504_s1 + $0xd8] sm:$0xff]   ;;  %v1137_v18 = vld [vmem:[%s1504_s1 + $0xe0] sm:$0xff]   ;;  %v1141_v22 = vld [vmem:[%s1504_s1 + $0xe8] sm:$0xff]  }
   0x8   :  { %996 = vmatprep.subr.bf16.mxu0 %v1127_v8  ;;  %v1134_v15 = vld [vmem:[%s1504_s1 + $0x98] sm:$0xff]   ;;  %v1138_v19 = vld [vmem:[%s1504_s1 + $0xa0] sm:$0xff]   ;;  %v1142_v23 = vld [vmem:[%s1504_s1 + $0xa8] sm:$0xff]  }
   0x9   :  { %1017 = vmatpush3.bf16.msra.mxu1 %v1126_v7  ;;  %v1143_v24 = vld [vmem:[%s1504_s1 + $0x70] sm:$0xff]   ;;  %v1147_v28 = vld [vmem:[%s1504_s1 + $0x78] sm:$0xff]   ;;  %v34_v31 = vld [vmem:[%s1505_s0 + $0x8] sm:$0xff] }
   0xa   :  { %1018 = vmatprep.subr.bf16.mxu1 %v1129_v10  ;;  %v1144_v25 = vld [vmem:[%s1504_s1 + $0x30] sm:$0xff]   ;;  %v1148_v29 = vld [vmem:[%s1504_s1 + $0x38] sm:$0xff]   ;;  %v41_v32 = vld [vmem:[%s1505_s0 + $0x40] sm:$0xff] }
   0xb   :  { %997 = vmatpush3.bf16.msra.mxu0 %v1128_v9  ;;  %v1145_v26 = vld [vmem:[%s1504_s1 + $0xf0] sm:$0xff]   ;;  %v1149_v30 = vld [vmem:[%s1504_s1 + $0xf8] sm:$0xff]   ;;  %v48_v33 = vpack.c.bf16 %v41_v32, %v34_v31  ;;  %v33_v35 = vld [vmem:[%s1505_s0] sm:$0xff] }
   0xc   :  { %998 = vmatprep.subr.bf16.mxu0 %v1131_v12  ;;  %v1146_v27 = vld [vmem:[%s1504_s1 + $0xb0] sm:$0xff]   ;;  %v1150_v34 = vld [vmem:[%s1504_s1 + $0xb8] sm:$0xff]   ;;  %v1151_v38 = vld [vmem:[%s1504_s1 + $0x140] sm:$0xff]  }
   0xd   :  { %1019 = vmatpush3.bf16.msra.mxu1 %v1130_v11  ;;  %v40_v36 = vld [vmem:[%s1505_s0 + $0x38] sm:$0xff]  ;;  %489 = vmatprep.mubr.bf16.mxu0 %v48_v33  ;;  %v43_v40 = vld [vmem:[%s1505_s0 + $0x50] sm:$0xff]  ;;  %v1152_v42 = vld [vmem:[%s1504_s1 + $0x100] sm:$0xff]  }
   0xe   :  { %1020 = vmatprep.subr.bf16.mxu1 %v1133_v14  ;;  %v47_v37 = vpack.c.bf16 %v40_v36, %v33_v35  ;;  %v36_v39 = vld [vmem:[%s1505_s0 + $0x18] sm:$0xff]  ;;  %v35_v44 = vld [vmem:[%s1505_s0 + $0x10] sm:$0xff]  ;;  %v42_v45 = vld [vmem:[%s1505_s0 + $0x48] sm:$0xff] }
   0xf   :  { %999 = vmatpush3.bf16.msra.mxu0 %v1132_v13  ;;  %v50_v41 = vpack.c.bf16 %v43_v40, %v36_v39  ;;  %v49_v46 = vpack.c.bf16 %v42_v45, %v35_v44  ;;  %v1153_v47 = vld [vmem:[%s1504_s1 + $0x148] sm:$0xff]   ;;  %v1155_v49 = vld [vmem:[%s1504_s1 + $0x150] sm:$0xff]   ;;  %v1157_v51 = vld [vmem:[%s1504_s1 + $0x158] sm:$0xff]  }
  0x10   :  { %1000 = vmatprep.subr.bf16.mxu0 %v1135_v16  ;;  %v1154_v48 = vld [vmem:[%s1504_s1 + $0x108] sm:$0xff]   ;;  %v1156_v50 = vld [vmem:[%s1504_s1 + $0x110] sm:$0xff]   ;;  %v1158_v52 = vld [vmem:[%s1504_s1 + $0x118] sm:$0xff]  }
  0x11   :  { %1021 = vmatpush3.bf16.msra.mxu1 %v1134_v15  ;;  %530 = vmatprep.mubr.bf16.mxu1 %v50_v41  ;;  %v1159_v53 = vld [vmem:[%s1504_s1 + $0x160] sm:$0xff]   ;;  %v1161_v55 = vld [vmem:[%s1504_s1 + $0x168] sm:$0xff]   ;;  %v39_v61 = vld [vmem:[%s1505_s0 + $0x30] sm:$0xff] }
  0x12   :  { %1022 = vmatprep.subr.bf16.mxu1 %v1137_v18  ;;  %v1160_v54 = vld [vmem:[%s1504_s1 + $0x120] sm:$0xff]   ;;  %v38_v57 = vld [vmem:[%s1505_s0 + $0x28] sm:$0xff]  ;;  %v1163_v63 = vld [vmem:[%s1504_s1 + $0x170] sm:$0xff]  }
  0x13   :  { %1001 = vmatpush3.bf16.msra.mxu0 %v1136_v17  ;;  %v1167_v56 = vld [vmem:[%s1504_s1 + $0x180] sm:$0xff]   ;;  %v1162_v59 = vld [vmem:[%s1504_s1 + $0x128] sm:$0xff]   ;;  %v1164_v1 = vld [vmem:[%s1504_s1 + $0x130] sm:$0xff]  }
  0x14   :  { %1002 = vmatprep.subr.bf16.mxu0 %v1139_v20  ;;  %v45_v58 = vld [vmem:[%s1505_s0 + $0x60] sm:$0xff]  ;;  %v46_v62 = vld [vmem:[%s1505_s0 + $0x68] sm:$0xff]  ;;  %v1165_v2 = vld [vmem:[%s1504_s1 + $0x178] sm:$0xff]  }
  0x15   :  { %1023 = vmatpush3.bf16.msra.mxu1 %v1138_v19  ;;  %v52_v60 = vpack.c.bf16 %v45_v58, %v38_v57  ;;  %v53_v0 = vpack.c.bf16 %v46_v62, %v39_v61  ;;  %v1166_v3 = vld [vmem:[%s1504_s1 + $0x138] sm:$0xff]   ;;  %v37_v4 = vld [vmem:[%s1505_s0 + $0x20] sm:$0xff]  ;;  %v1169_v8 = vld [vmem:[%s1506_s3 + $0x8] sm:$0xff]  }
  0x16   :  { %1024 = vmatprep.subr.bf16.mxu1 %v1141_v22  ;;  %v44_v5 = vld [vmem:[%s1505_s0 + $0x58] sm:$0xff]  ;;  %v1168_v7 = vld [vmem:[%s1506_s3] sm:$0xff]   ;;  %v1170_v9 = vld [vmem:[%s1506_s3 + $0x10] sm:$0xff]  }
  0x17   :  { %1003 = vmatpush3.bf16.msra.mxu0 %v1140_v21  ;;  %v51_v6 = vpack.c.bf16 %v44_v5, %v37_v4  ;;  %v1171_v10 = vld [vmem:[%s1506_s3 + $0x18] sm:$0xff]   ;;  %v914_v12 = vld [vmem:[%s1508_s2] ss:$0 sm:$0xff]  ;;  %v1178_v62 = vld [vmem:[%s1509_s7 + $0x10] sm:$0xff]  }
  0x18   :  { %1004 = vmatprep.subr.bf16.mxu0 %v1143_v24  ;;  %v1172_v45 = vld [vmem:[%s1507_s5] sm:$0xff]  }
  0x19   :  { %1025 = vmatpush3.bf16.msra.mxu1 %v1142_v23 }
  0x1a   :  { %1026 = vmatprep.subr.bf16.mxu1 %v1145_v26 }
  0x1b   :  { %1005 = vmatpush3.bf16.msra.mxu0 %v1144_v25 }
  0x1c   :  { %1006 = vmatprep.subr.bf16.mxu0 %v1147_v28 }
  0x1d   :  { %1027 = vmatpush3.bf16.msra.mxu1 %v1146_v27 }
  0x1e   :  { %1028 = vmatprep.subr.bf16.mxu1 %v1149_v30 }
  0x1f   :  { %1007 = vmatpush3.bf16.msra.mxu0 %v1148_v29 }
  0x20   :  { %1036 = vmatprep.subr.bf16.mxu0 %v1151_v38 }
  0x21   :  { %1029 = vmatpush3.bf16.msra.mxu1 %v1150_v34 }
  0x22   :  { %1075 = vmatprep.subr.bf16.mxu1 %v1188_v43  ;;  %490 = vmatmul.mubr.bf16.vlgmr.msra.gmra.mrb[0].mxu0 %v47_v37 }
  0x23   :  { %1037 = vmatpush3.bf16.msra.mxu0 %v1152_v42  ;;  %571 = vmatprep.mubr.bf16.mxu0 %v52_v60 }
  0x24   :  { %531 = vmatmul.mubr.bf16.vlgmr.msra.gmra.mrb[0].mxu1 %v49_v46  ;;  %1038 = vmatprep.subr.bf16.mxu0 %v1153_v47  ;;  %v1173_v47 = vld [vmem:[%s1507_s5 + $0x8] sm:$0xff]  }
  0x25   :  { %1077 = vmatprep.mubr.msk.bf16.mxu1 %vm1189_vm0, %v1188_v43  ;;  %1076 = vmatpush3.bf16.msra.mxu1 %v1167_v56 }
  0x26   :  { %1081 = vmatprep.subr.bf16.mxu1 %v1188_v43 }
  0x27   :  { %1039 = vmatpush3.bf16.msra.mxu0 %v1154_v48  ;;  %v1174_v48 = vld [vmem:[%s1507_s5 + $0x10] sm:$0xff]  }
  0x28   :  { %1040 = vmatprep.subr.bf16.mxu0 %v1155_v49  ;;  %v1175_v49 = vld [vmem:[%s1507_s5 + $0x18] sm:$0xff]  }
  0x2b   :  { %1041 = vmatpush3.bf16.msra.mxu0 %v1156_v50  ;;  %v1176_v50 = vld [vmem:[%s1509_s7] sm:$0xff]  }
  0x2c   :  { %1042 = vmatprep.subr.bf16.mxu0 %v1157_v51  ;;  %1078 = vmatmul.mubr.msk.bf16.vlgmr.msra.gmra.mrb[4].mxu1 %vm453_vm1, %v53_v0  ;;  %v1177_v51 = vld [vmem:[%s1509_s7 + $0x8] sm:$0xff]   ;;  %v971_v0 = vld [vmem:[%s1511_s6] ss:$0 sm:$0xff] }
  0x2d   :  { %1089 = vmatprep.mubr.msk.bf16.mxu1 %vm1189_vm0, %v1188_v43  ;;  %1082 = vmatpush3.bf16.msra.mxu1 %v1168_v7 }
  0x2e   :  { %1083 = vmatprep.subr.bf16.mxu1 %v1188_v43 }
  0x2f   :  { %1043 = vmatpush3.bf16.msra.mxu0 %v1158_v52  ;;  %v965_v52 = vld [vmem:[%s1510_s4] ss:$0 sm:$0xff] }
  0x30   :  { %1044 = vmatprep.subr.bf16.mxu0 %v1159_v53 }
  0x31   :  { %1084 = vmatpush3.bf16.msra.mxu1 %v1169_v8 }
  0x32   :  { %1085 = vmatprep.subr.bf16.mxu1 %v1188_v43 }
  0x33   :  { %1045 = vmatpush3.bf16.msra.mxu0 %v1160_v54 }
  0x34   :  { %1046 = vmatprep.subr.bf16.mxu0 %v1161_v55 }
  0x35   :  { %1086 = vmatpush3.bf16.msra.mxu1 %v1170_v9 }
  0x36   :  { %1087 = vmatprep.subr.bf16.mxu1 %v1188_v43 }
  0x37   :  { %1047 = vmatpush3.bf16.msra.mxu0 %v1162_v59 }
  0x38   :  { %1048 = vmatprep.subr.bf16.mxu0 %v1163_v63  ;;  %v1179_v63 = vld [vmem:[%s1509_s7 + $0x18] sm:$0xff]  }
  0x39   :  { %1088 = vmatpush3.bf16.msra.mxu1 %v1171_v10 }
  0x3a   :  { %1093 = vmatprep.subr.bf16.mxu1 %v1188_v43 }
  0x3b   :  { %1049 = vmatpush3.bf16.msra.mxu0 %v1164_v1 }
  0x3c   :  { %1050 = vmatprep.subr.bf16.mxu0 %v1165_v2 }
  0x3f   :  { %1051 = vmatpush3.bf16.msra.mxu0 %v1166_v3 }
  0x40   :  { %1105 = vmatprep.subr.bf16.mxu0 %v1188_v43 }
  0x42   :  { %572 = vmatmul.mubr.bf16.vlgmr.msra.gmra.mrb[4].mxu0 %v51_v6 }
  0x43   :  { %1113 = vmatprep.mubr.msk.bf16.mxu0 %vm1189_vm0, %v1188_v43  ;;  %1106 = vmatpush3.bf16.msra.mxu0 %v1176_v50 }
  0x44   :  { %1107 = vmatprep.subr.bf16.mxu0 %v1188_v43 }
  0x47   :  { %1108 = vmatpush3.bf16.msra.mxu0 %v1177_v51 }
  0x48   :  { %1109 = vmatprep.subr.bf16.mxu0 %v1188_v43 }
  0x4b   :  { %1110 = vmatpush3.bf16.msra.mxu0 %v1178_v62 }
  0x4c   :  { %1111 = vmatprep.subr.bf16.mxu0 %v1188_v43 }
  0x4f   :  { %1112 = vmatpush3.bf16.msra.mxu0 %v1179_v63 }
  0xf5   :  { %v1008_v11 = vpop.f32.mrb[0].mxu0 }
  0xf6   :  { %v1009_v13 = vpop.f32.mrb[1].mxu0 }
  0xf7   :  { %v1010_v14 = vadd.f32 %v1009_v13, %v1008_v11  ;;  %v1011_v15 = vpop.f32.mrb[2].mxu0  ;;  %v1030_v16 = vpop.f32.mrb[0].mxu1 }
  0xf8   :  { %v1012_v17 = vpop.f32.mrb[3].mxu0  ;;  %v1031_v20 = vpop.f32.mrb[1].mxu1 }
  0xf9   :  { %v492_v18 = vadd.f32 %v1010_v14, %v914_v12  ;;  %v1013_v19 = vadd.f32 %v1012_v17, %v1011_v15  ;;  %v1032_v21 = vadd.f32 %v1031_v20, %v1030_v16  ;;  %v1033_v22 = vpop.f32.mrb[2].mxu1 }
  0xfa   :  { %v1034_v24 = vpop.f32.mrb[3].mxu1 }
  0xfb   :  { %v495_v23 = vadd.f32 %v1013_v19, %v914_v12  ;;  %v533_v25 = vadd.f32 %v1032_v21, %v492_v18  ;;  %v1035_v26 = vadd.f32 %v1034_v24, %v1033_v22 }
  0xfd   :  { %v536_v27 = vadd.f32 %v1035_v26, %v495_v23 }
  0xff   :  { %v614_v28 = vpop.f32.mrb[4].mxu1 }
 0x100   :  { %v1079_v29 = vpop.f32.mrb[5].mxu1 }
 0x101   :  { %v617_v30 = vpop.f32.mrb[6].mxu1 }
 0x102   :  { %v1080_v31 = vpop.f32.mrb[7].mxu1 }
 0x115   :  { %v1052_v32 = vpop.f32.mrb[4].mxu0 }
 0x116   :  { %v1053_v33 = vpop.f32.mrb[5].mxu0 }
 0x117   :  { %v1054_v34 = vadd.f32 %v1053_v33, %v1052_v32  ;;  %v1055_v35 = vpop.f32.mrb[6].mxu0 }
 0x118   :  { %v1056_v36 = vpop.f32.mrb[7].mxu0 }
 0x119   :  { %v574_v37 = vadd.f32 %v1054_v34, %v533_v25  ;;  %v1057_v38 = vadd.f32 %v1056_v36, %v1055_v35 }
 0x11b   :  { %v615_v39 = vadd.f32 %v614_v28, %v574_v37  ;;  %v577_v40 = vadd.f32 %v1057_v38, %v536_v27 }
 0x11d   :  { %v618_v41 = vadd.f32 %v617_v30, %v577_v40  ;;  %v621_v42 = vmax.f32 %v615_v39, 0.0 }
 0x11f   :  { %v622_v44 = vmax.f32 %v618_v41, 0.0 }
 0x121   :  { %v623_v46 = vpack.c.bf16 %v622_v44, %v621_v42 }
 0x123   :  { %1090 = vmatmul.mubr.msk.bf16.vlgmr.msra.gmra.mrb[8].mxu1 %vm663_vm2, %v623_v46 }
 0x124   :  { %1094 = vmatpush3.bf16.msra.mxu1 %v1172_v45  ;;  %1101 = vmatprep.mubr.msk.bf16.mxu1 %vm1189_vm0, %v1188_v43 }
 0x125   :  { %1095 = vmatprep.subr.bf16.mxu1 %v1188_v43 }
 0x128   :  { %1096 = vmatpush3.bf16.msra.mxu1 %v1173_v47 }
 0x129   :  { %1097 = vmatprep.subr.bf16.mxu1 %v1188_v43 }
 0x12c   :  { %1098 = vmatpush3.bf16.msra.mxu1 %v1174_v48 }
 0x12d   :  { %1099 = vmatprep.subr.bf16.mxu1 %v1188_v43  ;;  %v977_v43 = vld [vmem:[%s1512_s8] ss:$0 sm:$0xff] }
 0x130   :  { %1100 = vmatpush3.bf16.msra.mxu1 %v1175_v49 }
 0x1f6   :  { %v701_v53 = vpop.f32.mrb[8].mxu1 }
 0x1f7   :  { %v702_v54 = vadd.f32 %v965_v52, %v701_v53  ;;  %v1091_v55 = vpop.f32.mrb[9].mxu1 }
 0x1f8   :  { %v704_v56 = vpop.f32.mrb[10].mxu1 }
 0x1f9   :  { %v705_v57 = vadd.f32 %v965_v52, %v704_v56  ;;  %v1092_v58 = vpop.f32.mrb[11].mxu1  ;;  %v708_v59 = vmax.f32 %v702_v54, 0.0 }
 0x1fb   :  { %v709_v60 = vmax.f32 %v705_v57, 0.0 }
 0x1fd   :  { %v710_v61 = vpack.c.bf16 %v709_v60, %v708_v59 }
 0x1ff   :  { %1102 = vmatmul.mubr.msk.bf16.vlgmr.msra.gmra.mrb[12].mxu1 %vm663_vm2, %v710_v61 }
 0x2d2   :  { %v787_v1 = vpop.f32.mrb[12].mxu1 }
 0x2d3   :  { %v788_v2 = vadd.f32 %v971_v0, %v787_v1  ;;  %v1103_v3 = vpop.f32.mrb[13].mxu1 }
 0x2d4   :  { %v790_v4 = vpop.f32.mrb[14].mxu1 }
 0x2d5   :  { %v791_v5 = vadd.f32 %v971_v0, %v790_v4  ;;  %v1104_v6 = vpop.f32.mrb[15].mxu1  ;;  %v794_v7 = vmax.f32 %v788_v2, 0.0 }
 0x2d7   :  { %v795_v8 = vmax.f32 %v791_v5, 0.0 }
 0x2d9   :  { %v796_v9 = vpack.c.bf16 %v795_v8, %v794_v7 }
 0x2db   :  { %1114 = vmatmul.mubr.msk.bf16.vlgmr.msra.gmra.mrb[8].mxu0 %vm663_vm2, %v796_v9 }
 0x3ae   :  { %v873_v10 = vpop.f32.mrb[8].mxu0 }
 0x3af   :  { %v874_v11 = vadd.f32 %v977_v43, %v873_v10  ;;  %v1115_v12 = vpop.f32.mrb[9].mxu0 }
 0x3b0   :  { %v876_v13 = vpop.f32.mrb[10].mxu0 }
 0x3b1   :  { %880 = vmax.xlane.f32.xlu0 %v874_v11  ;;  %v1116_v14 = vpop.f32.mrb[11].mxu0  ;;  %v877_v15 = vadd.f32 %v977_v43, %v876_v13 }
 0x3b5   :  { %882 = vmax.xlane.f32.xlu0 %v877_v15 }
 0x43e   :  { %v881_v16 = vpop.xlane.xlu0 %880 }
 0x43f   :  { %v884_v17 = vsub.f32 %v874_v11, %v881_v16 }
 0x441   :  { %v886_v18 = vmul.f32 1.442695, %v884_v17 }
 0x442   :  { %v883_v19 = vpop.xlane.xlu0 %882 }
 0x443   :  { %v885_v20 = vsub.f32 %v877_v15, %v883_v19  ;;  %1180 = vpow2.f32 %v886_v18 }
 0x445   :  { %v888_v21 = vmul.f32 1.442695, %v885_v20 }
 0x447   :  { %1182 = vpow2.f32 %v888_v21 }
 0x44d   :  { %v1181_v22 = vpop.eup %1180 }
 0x44e   :  { %890 = vadd.xlane.f32.xlu1 %v1181_v22 }
 0x451   :  { %v1183_v23 = vpop.eup %1182 }
 0x452   :  { %892 = vadd.xlane.f32.xlu1 %v1183_v23 }
 0x4db   :  { %v891_v24 = vpop.xlane.xlu1 %890 }
 0x4dc   :  { %1184 = vlog2.f32 %v891_v24 }
 0x4df   :  { %v893_v25 = vpop.xlane.xlu1 %892 }
 0x4e0   :  { %1186 = vlog2.f32 %v893_v25 }
 0x4e6   :  { %v1185_v26 = vpop.eup %1184 }
 0x4e7   :  { %v895_v27 = vmul.f32 0.6931472, %v1185_v26 }
 0x4e9   :  { %v898_v30 = vsub.f32 %v884_v17, %v895_v27 }
 0x4ea   :  { %v1187_v28 = vpop.eup %1186 }
 0x4eb   :  { %v897_v29 = vmul.f32 0.6931472, %v1187_v28 }
 0x4ed   :  { %v899_v31 = vsub.f32 %v885_v20, %v897_v29 }
 0x4ef   :  { %v990_v32 = vpack.c.bf16 %v899_v31, %v898_v30 }
 0x4f1   :  { %991 = vst [vmem:[%s1513_s9] sm:$0xff] %v990_v32  }

</bundles_post_ra>
